<compile_context>
chip_gen: v5e
topology: v5e:2x2
jax: 0.10.0
libtpu: 0.0.40
codegen_flags: <defaults>
</compile_context>

<pallas_src>
import jax
import jax.numpy as jnp
from jax.experimental import pallas as pl
from jax.experimental.pallas import tpu as pltpu


def _round_up(x, m):
    return ((x + m - 1) // m) * m


def crossnet_kernel(base_ref, cross_ref, w_ref, b_ref, out_ref):
    # One batch-tile per grid step; full hidden dim resident in VMEM.
    cross = cross_ref[...]                                     # [tm, H], compute dtype
    # Linear: cross @ W^T + b  (w_ref already holds W^T, shape [H, H])
    wx = jnp.dot(cross, w_ref[...],
                 preferred_element_type=jnp.float32)           # MXU, f32 accumulate
    wx = wx + b_ref[...]                                       # bias kept in f32, [1, H]
    # Cross interaction in f32: base * W(cross) + cross
    out = base_ref[...].astype(jnp.float32) * wx + cross.astype(jnp.float32)
    out_ref[...] = out.astype(out_ref.dtype)


def prepare_crossnet_params(W, b, compute_dtype=None):
    """Hoist the W.T transpose (and optional low-precision cast) out of the
    per-forward-call path. W: [out, in] (PyTorch layout); b: [hidden]."""
    w_t = jnp.asarray(W).T                                     # [in, out]
    if compute_dtype is not None:
        w_t = w_t.astype(compute_dtype)
    b2 = jnp.asarray(b, jnp.float32).reshape(1, -1)            # bias added in f32
    return w_t, b2


def _choose_block_batch(B, H, ebytes, requested, vmem_target_bytes):
    """Pick the batch tile: as large as possible subject to the VMEM budget
    (W single-buffered + 3 double-buffered [tm, H] tiles), aligned to the
    sublane packing of the compute dtype, and never larger than needed."""
    align = 16 if ebytes < 4 else 8
    fixed = H * H * ebytes + H * 4                              # resident W + bias
    avail = max(vmem_target_bytes - fixed, 6 * align * H * ebytes)
    tm_cap = max(align, (avail // (6 * H * ebytes)) // align * align)
    tm = min(requested, tm_cap, _round_up(B, align))
    return max(align, (tm // align) * align)


def crossnet_comp(base, cross, w_t, b2, *, block_batch=512,
                  vmem_target_bytes=48 << 20, alias_cross_to_out=False):
    """result = base * (cross @ W.T + b) + cross.

    base, cross : [B, H]
    w_t         : [H, H]  pre-transposed weight (see prepare_crossnet_params)
    b2          : [1, H]  f32 bias
    """
    B, H = base.shape
    compute_dtype = w_t.dtype
    ebytes = jnp.dtype(compute_dtype).itemsize

    base = base.astype(compute_dtype)
    cross = cross.astype(compute_dtype)

    tm = _choose_block_batch(B, H, ebytes, block_batch, vmem_target_bytes)

    # Ragged batch: pad to a tile multiple (padded rows are zeros -> output 0,
    # sliced off below).
    B_pad = _round_up(B, tm)
    if B_pad != B:
        pad = ((0, B_pad - B), (0, 0))
        base = jnp.pad(base, pad)
        cross = jnp.pad(cross, pad)

    grid = (B_pad // tm,)

    # VMEM: W (1 buf) + bias (1 buf) + base/cross/out tiles (2 bufs each) + headroom.
    vmem_bytes = H * H * ebytes + H * 4 + 6 * tm * H * ebytes + (2 << 20)
    vmem_bytes = max(int(vmem_bytes), 32 << 20)

    extra_kwargs = {}
    if alias_cross_to_out:
        # Safe when the caller no longer needs `cross` (saves an HBM output alloc).
        extra_kwargs["input_output_aliases"] = {1: 0}

    out = pl.pallas_call(
        crossnet_kernel,
        out_shape=jax.ShapeDtypeStruct((B_pad, H), compute_dtype),
        grid_spec=pltpu.PrefetchScalarGridSpec(
            num_scalar_prefetch=0,
            grid=grid,
            in_specs=[
                pl.BlockSpec((tm, H), lambda i: (i, 0)),       # base tile
                pl.BlockSpec((tm, H), lambda i: (i, 0)),       # cross tile
                pl.BlockSpec((H, H), lambda i: (0, 0),         # W^T, resident,
                             pipeline_mode=pl.Buffered(1)),    #   single-buffered
                pl.BlockSpec((1, H), lambda i: (0, 0),         # bias, resident
                             pipeline_mode=pl.Buffered(1)),
            ],
            out_specs=pl.BlockSpec((tm, H), lambda i: (i, 0)),
        ),
        compiler_params=pltpu.CompilerParams(
            dimension_semantics=("parallel",),                 # megacore across batch tiles
            vmem_limit_bytes=vmem_bytes,
        ),
        **extra_kwargs,
    )(base, cross, w_t, b2)

    return out[:B] if B_pad != B else out


if __name__ == "__main__":
    # Small config: 5 features, embedding_size=32 -> hidden = (5-1)*32 = 128.
    # batch=40 is deliberately not a multiple of 8/16 to exercise the pad path.
    batch = 40
    hidden = 128

    key = jax.random.PRNGKey(0)
    k_base, k_cross, k_w, k_b = jax.random.split(key, 4)

    base = jax.random.normal(k_base, (batch, hidden), dtype=jnp.float32)
    cross = jax.random.normal(k_cross, (batch, hidden), dtype=jnp.float32)

    # nn.init.normal_(W.weight, mean=0, std=0.01)
    W = 0.01 * jax.random.normal(k_w, (hidden, hidden), dtype=jnp.float32)
    # nn.Linear default bias init: U(-1/sqrt(in), 1/sqrt(in))
    bound = 1.0 / float(hidden) ** 0.5
    b = jax.random.uniform(k_b, (hidden,), dtype=jnp.float32,
                           minval=-bound, maxval=bound)

    # Reference (same math as the PyTorch forward).
    ref = base * (cross @ W.T + b) + cross

    # --- f32 path -----------------------------------------------------------
    w_t32, b2 = prepare_crossnet_params(W, b)            # transpose hoisted, done once
    out32 = jax.block_until_ready(crossnet_comp(base, cross, w_t32, b2))
    assert out32.shape == (batch, hidden)
    assert jnp.allclose(out32, ref, atol=1e-5, rtol=1e-5), "f32 mismatch vs reference"

    # --- bf16 path (halves HBM traffic on v6e/v7x; f32 MXU accumulate) ------
    w_t16, b2_16 = prepare_crossnet_params(W, b, compute_dtype=jnp.bfloat16)
    out16 = jax.block_until_ready(crossnet_comp(base, cross, w_t16, b2_16))
    assert out16.shape == (batch, hidden)
    assert jnp.allclose(out16.astype(jnp.float32), ref, atol=5e-2, rtol=5e-2), \
        "bf16 mismatch vs reference"

    print("KERNEL_OK")
</pallas_src>

<mosaic_0001>
module attributes {stable_mosaic.version = 11 : i64} {
  func.func @crossnet_kernel(%arg0: i32, %arg1: memref<40x128xf32, #tpu.memory_space<vmem>>, %arg2: memref<40x128xf32, #tpu.memory_space<vmem>>, %arg3: memref<128x128xf32, #tpu.memory_space<vmem>>, %arg4: memref<1x128xf32, #tpu.memory_space<vmem>>, %arg5: memref<40x128xf32, #tpu.memory_space<vmem>>) attributes {dimension_semantics = [#tpu.dimension_semantics<parallel>], iteration_bounds = array<i64: 1>, scalar_prefetch = 0 : i64, scratch_operands = 0 : i64, tpu.core_type = #tpu.core_type<tc>, window_params = [{transform_indices = @transform_0, window_bounds = array<i64: 40, 128>}, {transform_indices = @transform_1, window_bounds = array<i64: 40, 128>}, {pipeline_mode = #tpu.pipeline_mode<synchronous>, transform_indices = @transform_2, window_bounds = array<i64: 128, 128>}, {pipeline_mode = #tpu.pipeline_mode<synchronous>, transform_indices = @transform_3, window_bounds = array<i64: 1, 128>}, {transform_indices = @transform_4, window_bounds = array<i64: 40, 128>}]} {
    %c0 = arith.constant 0 : index
    %c0_0 = arith.constant 0 : index
    %0 = vector.load %arg2[%c0, %c0_0] : memref<40x128xf32, #tpu.memory_space<vmem>>, vector<40x128xf32>
    %c0_1 = arith.constant 0 : index
    %c0_2 = arith.constant 0 : index
    %1 = vector.load %arg3[%c0_1, %c0_2] : memref<128x128xf32, #tpu.memory_space<vmem>>, vector<128x128xf32>
    %cst = arith.constant dense<0.000000e+00> : vector<40x128xf32>
    %2 = tpu.matmul %0, %1, %cst {dimension_numbers = #tpu.dot_dimension_numbers<[1], [0], [0], [1], [0, 0, 1, 1], [], []>} : vector<40x128xf32>, vector<128x128xf32>, vector<40x128xf32> -> vector<40x128xf32>
    %c0_3 = arith.constant 0 : index
    %c0_4 = arith.constant 0 : index
    %3 = vector.load %arg4[%c0_3, %c0_4] : memref<1x128xf32, #tpu.memory_space<vmem>>, vector<1x128xf32>
    %4 = vector.broadcast %3 : vector<1x128xf32> to vector<40x128xf32>
    %5 = arith.addf %2, %4 : vector<40x128xf32>
    %c0_5 = arith.constant 0 : index
    %c0_6 = arith.constant 0 : index
    %6 = vector.load %arg1[%c0_5, %c0_6] : memref<40x128xf32, #tpu.memory_space<vmem>>, vector<40x128xf32>
    %7 = arith.mulf %6, %5 : vector<40x128xf32>
    %8 = arith.addf %7, %0 : vector<40x128xf32>
    %c0_7 = arith.constant 0 : index
    %c0_8 = arith.constant 0 : index
    %9 = vector.load %arg5[%c0_7, %c0_8] : memref<40x128xf32, #tpu.memory_space<vmem>>, vector<40x128xf32>
    tpu.vector_store %arg5[%c0_7, %c0_8], %8 {strides = array<i32>} : memref<40x128xf32, #tpu.memory_space<vmem>>, vector<40x128xf32>,
    return
  }
  func.func @transform_0(%arg0: i32) -> (i32, i32) {
    %c0_i32 = arith.constant 0 : i32
    %c0_i32_0 = arith.constant 0 : i32
    return %arg0, %c0_i32 : i32, i32
  }
  func.func @transform_1(%arg0: i32) -> (i32, i32) {
    %c0_i32 = arith.constant 0 : i32
    %c0_i32_0 = arith.constant 0 : i32
    return %arg0, %c0_i32 : i32, i32
  }
  func.func @transform_2(%arg0: i32) -> (i32, i32) {
    %c0_i32 = arith.constant 0 : i32
    %c0_i32_0 = arith.constant 0 : i32
    %c0_i32_1 = arith.constant 0 : i32
    return %c0_i32, %c0_i32_0 : i32, i32
  }
  func.func @transform_3(%arg0: i32) -> (i32, i32) {
    %c0_i32 = arith.constant 0 : i32
    %c0_i32_0 = arith.constant 0 : i32
    %c0_i32_1 = arith.constant 0 : i32
    return %c0_i32, %c0_i32_0 : i32, i32
  }
  func.func @transform_4(%arg0: i32) -> (i32, i32) {
    %c0_i32 = arith.constant 0 : i32
    %c0_i32_0 = arith.constant 0 : i32
    return %arg0, %c0_i32 : i32, i32
  }
}

</mosaic_0001>

<bundles_post_ra>
// kernel: tpu_custom_call.1
= control target key start
LH: loop header
LB: loop body
LE: loop exit
PB: predicated region body
PF: predicated region fallthrough
CT: control target
= control target key end

     0   :  { %9 = vsyncpa [#allocation3], 0  ;;  %s377_s0 = inlined_call_operand.hbm [shape: f32[40,128], index: 0, kind: input, shape index: {}]   ;;  %s378_s1 = inlined_call_operand.hbm [shape: f32[40,128], index: 1, kind: input, shape index: {}]   ;;  %s379_s2 = inlined_call_operand.hbm [shape: f32[128,128], index: 2, kind: input, shape index: {}]   ;;  %s380_s3 = inlined_call_operand.vmem [shape: f32[1,128], index: 3, kind: input, shape index: {}]   ;;  %s381_s4 = inlined_call_operand.hbm [shape: f32[40,128], index: 4, kind: output, shape index: {}]  }
   0x1   :  { %10 = vsyncpa [#allocation6], 0 }
   0x2   :  { %11 = vsyncpa [#allocation4], 0  ;;  %s29_s17 = sshll.u32 %s378_s1, 4  ;;  %s319_s18 = smov [#allocation5]   ;;  %s30_s17 = int_to_ptr.hbm [resolvable:$true] %s29_s17 }
   0x3   :  { %s31_s19 = sshll.u32 %s319_s18, 4  ;;  %s16_s22 = sshll.u32 %s377_s0, 4  ;;  %s32_s19 = int_to_ptr.vmem [resolvable:$true] %s31_s19  ;;  %s17_s22 = int_to_ptr.hbm [resolvable:$true] %s16_s22 }
   0x4   :  { %s320_s23 = smov 128   ;;  %s321_s24 = smov 8  }
   0x5   :  { %37 = dma.hbm_to_vmem [thread:$0]  %s30_s17, 640, %s32_s19, [#allocation6], %s320_s23, %s320_s23, %s321_s24  }
   0x6   :  { %s322_s25 = smov [#allocation2]   ;;  %s42_s1 = sshll.u32 %s379_s2, 4  ;;  %s43_s1 = int_to_ptr.hbm [resolvable:$true] %s42_s1 }
   0x7   :  { %s18_s26 = sshll.u32 %s322_s25, 4  ;;  %s323_s0 = smov [#allocation7]   ;;  %s19_s26 = int_to_ptr.vmem [resolvable:$true] %s18_s26 }
   0x8   :  { %24 = dma.hbm_to_vmem [thread:$0]  %s17_s22, 640, %s19_s26, [#allocation3], %s320_s23, %s320_s23, %s321_s24  }
   0x9   :  { %s44_s29 = sshll.u32 %s323_s0, 4  ;;  %s45_s29 = int_to_ptr.vmem [resolvable:$true] %s44_s29 }
   0xa   :  { %50 = dma.hbm_to_vmem [thread:$0]  %s43_s1, 2048, %s45_s29, [#allocation6], %s320_s23, %s320_s23, %s321_s24  }
   0xb   :  { %313 = dma.done.wait [#allocation3], 640  }
   0xc   :  { %314 = vsyncadd [#allocation3], 4294966656 }
   0xd   :  { %315 = dma.done.wait [#allocation6], 2688  }
   0xe   :  { %316 = vsyncadd [#allocation6], 4294964608  ;;  %v85_v0 = vld [vmem:[#allocation7 + $0x78] sm:$0xff]  ;;  %v84_v1 = vld [vmem:[#allocation7 + $0x70] sm:$0xff]  ;;  %s148_s8 = sshll.u32 %s381_s4, 4  ;;  %s149_s8 = int_to_ptr.hbm [resolvable:$true] %s148_s8 }
   0xf   :  { %164 = vmatpush.msra.mxu3 %v85_v0  ;;  %163 = vmatpush.msra.mxu2 %v85_v0  ;;  %v83_v2 = vld [vmem:[#allocation7 + $0x68] sm:$0xff]  ;;  %v82_v3 = vld [vmem:[#allocation7 + $0x60] sm:$0xff]  ;;  %v81_v4 = vld [vmem:[#allocation7 + $0x58] sm:$0xff] }
  0x10   :  { %90 = vmatpush.msra.mxu0 %v85_v0  ;;  %162 = vmatpush.msra.mxu1 %v85_v0  ;;  %v80_v5 = vld [vmem:[#allocation7 + $0x50] sm:$0xff]  ;;  %v79_v6 = vld [vmem:[#allocation7 + $0x48] sm:$0xff]  ;;  %v78_v7 = vld [vmem:[#allocation7 + $0x40] sm:$0xff] }
  0x11   :  { %167 = vmatpush.msra.mxu3 %v84_v1  ;;  %166 = vmatpush.msra.mxu2 %v84_v1  ;;  %v77_v8 = vld [vmem:[#allocation7 + $0x38] sm:$0xff]  ;;  %v76_v9 = vld [vmem:[#allocation7 + $0x30] sm:$0xff]  ;;  %v75_v10 = vld [vmem:[#allocation7 + $0x28] sm:$0xff] }
  0x12   :  { %91 = vmatpush.msra.mxu0 %v84_v1  ;;  %165 = vmatpush.msra.mxu1 %v84_v1  ;;  %v74_v11 = vld [vmem:[#allocation7 + $0x20] sm:$0xff]  ;;  %v73_v12 = vld [vmem:[#allocation7 + $0x18] sm:$0xff]  ;;  %v72_v13 = vld [vmem:[#allocation7 + $0x10] sm:$0xff] }
  0x13   :  { %170 = vmatpush.msra.mxu3 %v83_v2  ;;  %169 = vmatpush.msra.mxu2 %v83_v2  ;;  %v71_v14 = vld [vmem:[#allocation7 + $0x8] sm:$0xff]  ;;  %v70_v15 = vld [vmem:[#allocation7] sm:$0xff]  ;;  %v68_v16 = vld [vmem:[#allocation5 + $0x18] sm:$0xff] }
  0x14   :  { %92 = vmatpush.msra.mxu0 %v83_v2  ;;  %168 = vmatpush.msra.mxu1 %v83_v2  ;;  %v67_v17 = vld [vmem:[#allocation5 + $0x10] sm:$0xff]  ;;  %v65_v18 = vld [vmem:[#allocation5] sm:$0xff]  ;;  %v66_v19 = vld [vmem:[#allocation5 + $0x8] sm:$0xff] }
  0x15   :  { %173 = vmatpush.msra.mxu3 %v82_v3  ;;  %172 = vmatpush.msra.mxu2 %v82_v3  ;;  %v69_v20 = vld [vmem:[#allocation5 + $0x20] sm:$0xff]  ;;  %v216_v21 = vld [vmem:[%s380_s3] ss:$0 sm:$0xff]  ;;  %v125_v31 = vld [vmem:[#allocation2 + $0x18] sm:$0xff]  ;;  %s324_s3 = smov [#allocation8]  }
  0x16   :  { %93 = vmatpush.msra.mxu0 %v82_v3  ;;  %171 = vmatpush.msra.mxu1 %v82_v3  ;;  %v122_v23 = vld [vmem:[#allocation2] sm:$0xff]  ;;  %v123_v25 = vld [vmem:[#allocation2 + $0x8] sm:$0xff]  ;;  %v124_v33 = vld [vmem:[#allocation2 + $0x10] sm:$0xff]  ;;  %s146_s5 = sshll.u32 %s324_s3, 4  ;;  %s147_s5 = int_to_ptr.vmem [resolvable:$true] %s146_s5 }
  0x17   :  { %176 = vmatpush.msra.mxu3 %v81_v4  ;;  %175 = vmatpush.msra.mxu2 %v81_v4  ;;  %v126_v43 = vld [vmem:[#allocation2 + $0x20] sm:$0xff] }
  0x18   :  { %94 = vmatpush.msra.mxu0 %v81_v4  ;;  %174 = vmatpush.msra.mxu1 %v81_v4 }
  0x19   :  { %179 = vmatpush.msra.mxu3 %v80_v5  ;;  %178 = vmatpush.msra.mxu2 %v80_v5 }
  0x1a   :  { %95 = vmatpush.msra.mxu0 %v80_v5  ;;  %177 = vmatpush.msra.mxu1 %v80_v5 }
  0x1b   :  { %182 = vmatpush.msra.mxu3 %v79_v6  ;;  %181 = vmatpush.msra.mxu2 %v79_v6 }
  0x1c   :  { %96 = vmatpush.msra.mxu0 %v79_v6  ;;  %180 = vmatpush.msra.mxu1 %v79_v6 }
  0x1d   :  { %185 = vmatpush.msra.mxu3 %v78_v7  ;;  %184 = vmatpush.msra.mxu2 %v78_v7 }
  0x1e   :  { %97 = vmatpush.msra.mxu0 %v78_v7  ;;  %183 = vmatpush.msra.mxu1 %v78_v7 }
  0x1f   :  { %188 = vmatpush.msra.mxu3 %v77_v8  ;;  %187 = vmatpush.msra.mxu2 %v77_v8 }
  0x20   :  { %98 = vmatpush.msra.mxu0 %v77_v8  ;;  %186 = vmatpush.msra.mxu1 %v77_v8 }
  0x21   :  { %191 = vmatpush.msra.mxu3 %v76_v9  ;;  %190 = vmatpush.msra.mxu2 %v76_v9 }
  0x22   :  { %99 = vmatpush.msra.mxu0 %v76_v9  ;;  %189 = vmatpush.msra.mxu1 %v76_v9 }
  0x23   :  { %194 = vmatpush.msra.mxu3 %v75_v10  ;;  %193 = vmatpush.msra.mxu2 %v75_v10 }
  0x24   :  { %100 = vmatpush.msra.mxu0 %v75_v10  ;;  %192 = vmatpush.msra.mxu1 %v75_v10 }
  0x25   :  { %197 = vmatpush.msra.mxu3 %v74_v11  ;;  %196 = vmatpush.msra.mxu2 %v74_v11 }
  0x26   :  { %101 = vmatpush.msra.mxu0 %v74_v11  ;;  %195 = vmatpush.msra.mxu1 %v74_v11 }
  0x27   :  { %200 = vmatpush.msra.mxu3 %v73_v12  ;;  %199 = vmatpush.msra.mxu2 %v73_v12 }
  0x28   :  { %102 = vmatpush.msra.mxu0 %v73_v12  ;;  %198 = vmatpush.msra.mxu1 %v73_v12 }
  0x29   :  { %203 = vmatpush.msra.mxu3 %v72_v13  ;;  %202 = vmatpush.msra.mxu2 %v72_v13 }
  0x2a   :  { %103 = vmatpush.msra.mxu0 %v72_v13  ;;  %201 = vmatpush.msra.mxu1 %v72_v13 }
  0x2b   :  { %206 = vmatpush.msra.mxu3 %v71_v14  ;;  %205 = vmatpush.msra.mxu2 %v71_v14 }
  0x2c   :  { %104 = vmatpush.msra.mxu0 %v71_v14  ;;  %204 = vmatpush.msra.mxu1 %v71_v14 }
  0x2d   :  { %209 = vmatpush.msra.mxu3 %v70_v15  ;;  %208 = vmatpush.msra.mxu2 %v70_v15 }
  0x2e   :  { %115 = vmatmul.f32.vlgmr.msra.gmra.mxu3 %v68_v16  ;;  %112 = vmatmul.f32.vlgmr.msra.gmra.mxu2 %v67_v17 }
  0x2f   :  { %105 = vmatpush.msra.mxu0 %v70_v15  ;;  %207 = vmatpush.msra.mxu1 %v70_v15 }
  0x30   :  { %106 = vmatmul.f32.vlgmr.msra.gmra.mxu0 %v65_v18  ;;  %109 = vmatmul.f32.vlgmr.msra.gmra.mxu1 %v66_v19 }
  0x36   :  { %118 = vmatmul.f32.gmra.mxu3 %v69_v20 }
  0xad   :  { %v107_v22 = vpop.f32.mrf.mxu0  ;;  %v110_v24 = vpop.f32.mrf.mxu1 }
  0xae   :  { %v108_v26 = vadd.f32 %v216_v21, %v107_v22  ;;  %v111_v27 = vadd.f32 %v216_v21, %v110_v24 }
  0xb0   :  { %v127_v28 = vmul.f32 %v122_v23, %v108_v26  ;;  %v128_v29 = vmul.f32 %v123_v25, %v111_v27 }
  0xb1   :  { %v116_v30 = vpop.f32.mrf.mxu3  ;;  %v113_v32 = vpop.f32.mrf.mxu2 }
  0xb2   :  { %v117_v34 = vadd.f32 %v216_v21, %v116_v30  ;;  %v132_v35 = vadd.f32 %v127_v28, %v65_v18  ;;  %v133_v36 = vadd.f32 %v128_v29, %v66_v19  ;;  %v114_v37 = vadd.f32 %v216_v21, %v113_v32 }
  0xb4   :  { %v130_v38 = vmul.f32 %v125_v31, %v117_v34  ;;  %137 = vst [vmem:[#allocation8] sm:$0xff] %v132_v35  ;;  %v129_v39 = vmul.f32 %v124_v33, %v114_v37 }
  0xb5   :  { %138 = vst [vmem:[#allocation8 + $0x8] sm:$0xff] %v133_v36 }
  0xb6   :  { %v135_v40 = vadd.f32 %v130_v38, %v68_v16  ;;  %v134_v41 = vadd.f32 %v129_v39, %v67_v17 }
  0xb8   :  { %140 = vst [vmem:[#allocation8 + $0x18] sm:$0xff] %v135_v40 }
  0xb9   :  { %139 = vst [vmem:[#allocation8 + $0x10] sm:$0xff] %v134_v41  ;;  %v119_v42 = vpop.f32.mrf.mxu3 }
  0xba   :  { %v120_v44 = vadd.f32 %v216_v21, %v119_v42 }
  0xbc   :  { %v131_v45 = vmul.f32 %v126_v43, %v120_v44 }
  0xbe   :  { %v136_v46 = vadd.f32 %v131_v45, %v69_v20 }
  0xc0   :  { %141 = vst [vmem:[#allocation8 + $0x20] sm:$0xff] %v136_v46 }
  0xc1   :  { %154 = dma.vmem_to_hbm [thread:$0]  %s147_s5, 640, %s149_s8, [#allocation4], %s320_s23, %s320_s23, %s321_s24  }
  0xc2   :  { %317 = dma.done.wait [#allocation4], 640  }
  0xc3   :  { %318 = vsyncadd [#allocation4], 4294966656 }
  0xc4   :  { %159 = vsyncpa [#allocation3], 1 }
  0xc5   :  { %160 = vsyncpa [#allocation6], 1 }
  0xc6   :  { %161 = vsyncpa [#allocation4], 1 }

</bundles_post_ra>
